<compile_context>
chip_gen: v7x
topology: tpu7x:2x2x1
jax: 0.10.0
libtpu: 0.0.40
codegen_flags: <defaults>
</compile_context>

<pallas_src>
import functools

import jax
import jax.numpy as jnp
from jax.experimental import pallas as pl
from jax.experimental.pallas import tpu as pltpu


def _ce_kernel(logits_ref, tgt_ref, loss_ref, cnt_ref, loss_acc, cnt_acc, *, hw):
    """One (batch-item, pixel-tile) grid step.

    logits_ref: (1, C, TP)  logits (original dtype), classes on sublanes, pixels on lanes
    tgt_ref:    (1, 1, TP)  int32 targets
    loss_ref:   (1, 1, 1)   f32 summed NLL for this batch item (written on last tile)
    cnt_ref:    (1, 1, 1)   f32 count of non-ignored pixels for this batch item
    loss_acc, cnt_acc: (1, TP) f32 lane-wise running partial sums (VMEM scratch)
    """
    j = pl.program_id(1)

    @pl.when(j == 0)
    def _init():
        loss_acc[...] = jnp.zeros_like(loss_acc)
        cnt_acc[...] = jnp.zeros_like(cnt_acc)

    x = logits_ref[0].astype(jnp.float32)       # (C, TP)
    t = tgt_ref[0]                              # (1, TP) int32
    num_classes, tp = x.shape

    # Global pixel index of each lane; masks the (possibly out-of-bounds) tail tile
    # and ignored / out-of-range targets (PyTorch default ignore_index = -100).
    col = j * tp + jax.lax.broadcasted_iota(jnp.int32, (1, tp), 1)
    valid = (col < hw) & (t >= 0) & (t < num_classes)

    # Numerically stable log-sum-exp over the class (sublane) axis.
    m = jnp.max(x, axis=0, keepdims=True)                               # (1, TP)
    lse = m + jnp.log(jnp.sum(jnp.exp(x - m), axis=0, keepdims=True))   # (1, TP)

    # Target-class logit via a one-hot select over sublanes (no dynamic gather on TPU).
    cls = jax.lax.broadcasted_iota(jnp.int32, x.shape, 0)               # (C, TP)
    tgt_logit = jnp.sum(jnp.where(cls == t, x, 0.0), axis=0, keepdims=True)

    loss = lse - tgt_logit                                              # (1, TP)
    loss_acc[...] += jnp.where(valid, loss, 0.0)
    cnt_acc[...] += jnp.where(valid, 1.0, 0.0)

    @pl.when(j == pl.num_programs(1) - 1)
    def _finalize():
        loss_ref[...] = jnp.full((1, 1, 1), jnp.sum(loss_acc[...]), jnp.float32)
        cnt_ref[...] = jnp.full((1, 1, 1), jnp.sum(cnt_acc[...]), jnp.float32)


def cross_entropy_loss_2d(inputs, targets, *, tile_p=None):
    """inputs: (N, C, H, W) float logits; targets: (N, H, W) int labels.
    Returns the scalar mean cross-entropy loss (nn.CrossEntropyLoss defaults:
    weight=None, size_average=True, ignore_index=-100)."""
    N, C, H, W = inputs.shape
    HW = H * W

    # Free reshapes only (contiguous trailing dims merged): no transpose, no pad
    # copy, and the logits keep their original dtype through HBM/DMA.
    logits = inputs.reshape(N, C, HW)
    tgt = targets.astype(jnp.int32).reshape(N, 1, HW)

    itemsize = jnp.dtype(inputs.dtype).itemsize
    if tile_p is None:
        # ~1 MiB of logits per grid step amortizes the ~0.35 us per-step overhead;
        # the 32K-pixel cap keeps double-buffered blocks + accumulators comfortably
        # under the scoped-VMEM budget on v5e (16 MiB default) and v7x (64 MiB
        # physical) even for small class counts.
        tile_p = (1 << 20) // max(1, C * itemsize)
        tile_p = max(512, min(32768, tile_p))
        tile_p = (tile_p // 128) * 128

    if HW <= tile_p:
        tp = HW           # full-extent block: no 128-lane alignment requirement
        grid_j = 1
    else:
        tp = tile_p       # multiple of 128; tail tile is masked in-kernel
        grid_j = pl.cdiv(HW, tp)

    # TODO(synk): for N == 1 on v7x, additionally split the pixel range into a
    # leading 2-way "parallel" axis so both TensorCores are used.

    kernel = functools.partial(_ce_kernel, hw=HW)

    loss_sums, counts = pl.pallas_call(
        kernel,
        out_shape=(
            jax.ShapeDtypeStruct((N, 1, 1), jnp.float32),
            jax.ShapeDtypeStruct((N, 1, 1), jnp.float32),
        ),
        grid_spec=pltpu.PrefetchScalarGridSpec(
            num_scalar_prefetch=0,
            grid=(N, grid_j),
            in_specs=[
                pl.BlockSpec((1, C, tp), lambda n, j: (n, 0, j)),
                pl.BlockSpec((1, 1, tp), lambda n, j: (n, 0, j)),
            ],
            out_specs=[
                pl.BlockSpec((1, 1, 1), lambda n, j: (n, 0, 0)),
                pl.BlockSpec((1, 1, 1), lambda n, j: (n, 0, 0)),
            ],
            scratch_shapes=[
                pltpu.VMEM((1, tp), jnp.float32),
                pltpu.VMEM((1, tp), jnp.float32),
            ],
        ),
        compiler_params=pltpu.CompilerParams(
            # Batch axis "parallel": shards whole batch items across v7x's two
            # TensorCores (accumulators stay core-private); pixel axis is the
            # running reduction -> "arbitrary" and last in the grid.
            dimension_semantics=("parallel", "arbitrary"),
            vmem_limit_bytes=32 * 1024 * 1024,
        ),
    )(logits, tgt)

    # weight=None, size_average=True: mean over non-ignored pixels.
    return jnp.sum(loss_sums) / jnp.sum(counts)


if __name__ == "__main__":
    key = jax.random.PRNGKey(0)
    k1, k2 = jax.random.split(key)

    N, C, H, W = 2, 4, 16, 16
    inputs = jax.random.normal(k1, (N, C, H, W), dtype=jnp.float32)
    targets = jax.random.randint(k2, (N, H, W), 0, C, dtype=jnp.int32)

    loss = cross_entropy_loss_2d(inputs, targets)
    loss = jax.block_until_ready(loss)

    # reference check in plain JAX (same semantics as nn.CrossEntropyLoss mean)
    logp = jax.nn.log_softmax(
        jnp.transpose(inputs, (0, 2, 3, 1)).reshape(-1, C), axis=-1)
    ref = -jnp.mean(jnp.take_along_axis(logp, targets.reshape(-1, 1), axis=-1))
    assert jnp.allclose(loss, ref, atol=1e-5, rtol=1e-5), (loss, ref)

    print("KERNEL_OK")
</pallas_src>

<mosaic_0001>
module attributes {stable_mosaic.version = 11 : i64} {
  func.func @_ce_kernel(%arg0: i32, %arg1: i32, %arg2: memref<1x4x256xf32, #tpu.memory_space<vmem>>, %arg3: memref<1x1x256xi32, #tpu.memory_space<vmem>>, %arg4: memref<1x1x1xf32, #tpu.memory_space<vmem>>, %arg5: memref<1x1x1xf32, #tpu.memory_space<vmem>>, %arg6: memref<1x256xf32, #tpu.memory_space<vmem>>, %arg7: memref<1x256xf32, #tpu.memory_space<vmem>>) attributes {dimension_semantics = [#tpu.dimension_semantics<parallel>, #tpu.dimension_semantics<arbitrary>], iteration_bounds = array<i64: 2, 1>, scalar_prefetch = 0 : i64, scratch_operands = 2 : i64, tpu.core_type = #tpu.core_type<tc>, window_params = [{transform_indices = @transform_0, window_bounds = array<i64: 1, 4, 256>}, {transform_indices = @transform_1, window_bounds = array<i64: 1, 1, 256>}, {transform_indices = @transform_2, window_bounds = array<i64: 1, 1, 1>}, {transform_indices = @transform_3, window_bounds = array<i64: 1, 1, 1>}]} {
    %c0_i32 = arith.constant 0 : i32
    %0 = arith.cmpi eq, %arg1, %c0_i32 : i32
    %1 = arith.extui %0 : i1 to i32
    %c0_i32_0 = arith.constant 0 : i32
    %2 = arith.cmpi ne, %1, %c0_i32_0 : i32
    scf.if %2 {
      %cst_24 = arith.constant 0.000000e+00 : f32
      %50 = vector.broadcast %cst_24 : f32 to vector<1x256xf32>
      %c0_25 = arith.constant 0 : index
      %c0_26 = arith.constant 0 : index
      %51 = vector.load %arg6[%c0_25, %c0_26] : memref<1x256xf32, #tpu.memory_space<vmem>>, vector<1x256xf32>
      tpu.vector_store %arg6[%c0_25, %c0_26], %50 {strides = array<i32>} : memref<1x256xf32, #tpu.memory_space<vmem>>, vector<1x256xf32>,
      %cst_27 = arith.constant 0.000000e+00 : f32
      %52 = vector.broadcast %cst_27 : f32 to vector<1x256xf32>
      %c0_28 = arith.constant 0 : index
      %c0_29 = arith.constant 0 : index
      %53 = vector.load %arg7[%c0_28, %c0_29] : memref<1x256xf32, #tpu.memory_space<vmem>>, vector<1x256xf32>
      tpu.vector_store %arg7[%c0_28, %c0_29], %52 {strides = array<i32>} : memref<1x256xf32, #tpu.memory_space<vmem>>, vector<1x256xf32>,
    } else {
    }
    %c0 = arith.constant 0 : index
    %c0_1 = arith.constant 0 : index
    %c0_2 = arith.constant 0 : index
    %3 = vector.load %arg2[%c0, %c0_1, %c0_2] : memref<1x4x256xf32, #tpu.memory_space<vmem>>, vector<1x4x256xf32>
    %4 = vector.shape_cast %3 : vector<1x4x256xf32> to vector<4x256xf32>
    %c0_3 = arith.constant 0 : index
    %c0_4 = arith.constant 0 : index
    %c0_5 = arith.constant 0 : index
    %5 = vector.load %arg3[%c0_3, %c0_4, %c0_5] : memref<1x1x256xi32, #tpu.memory_space<vmem>>, vector<1x1x256xi32>
    %6 = vector.shape_cast %5 : vector<1x1x256xi32> to vector<1x256xi32>
    %c256_i32 = arith.constant 256 : i32
    %7 = arith.muli %arg1, %c256_i32 : i32
    %8 = tpu.iota {dimensions = array<i32: 1>} : vector<1x256xi32>
    %9 = vector.broadcast %7 : i32 to vector<1x256xi32>
    %10 = arith.addi %9, %8 : vector<1x256xi32>
    %c256_i32_6 = arith.constant 256 : i32
    %11 = vector.broadcast %c256_i32_6 : i32 to vector<1x256xi32>
    %12 = arith.cmpi slt, %10, %11 : vector<1x256xi32>
    %c0_i32_7 = arith.constant 0 : i32
    %13 = vector.broadcast %c0_i32_7 : i32 to vector<1x256xi32>
    %14 = arith.cmpi sge, %6, %13 : vector<1x256xi32>
    %15 = arith.andi %12, %14 : vector<1x256xi1>
    %c4_i32 = arith.constant 4 : i32
    %16 = vector.broadcast %c4_i32 : i32 to vector<1x256xi32>
    %17 = arith.cmpi slt, %6, %16 : vector<1x256xi32>
    %18 = arith.andi %15, %17 : vector<1x256xi1>
    %cst = arith.constant dense<0xFF800000> : vector<256xf32>
    %19 = vector.multi_reduction <maximumf>, %4, %cst [0] : vector<4x256xf32> to vector<256xf32>
    %20 = vector.shape_cast %19 : vector<256xf32> to vector<1x256xf32>
    %21 = vector.broadcast %20 : vector<1x256xf32> to vector<4x256xf32>
    %22 = arith.subf %4, %21 : vector<4x256xf32>
    %23 = math.exp %22 : vector<4x256xf32>
    %cst_8 = arith.constant dense<0.000000e+00> : vector<256xf32>
    %24 = vector.multi_reduction <add>, %23, %cst_8 [0] : vector<4x256xf32> to vector<256xf32>
    %25 = vector.shape_cast %24 : vector<256xf32> to vector<1x256xf32>
    %26 = math.log %25 : vector<1x256xf32>
    %27 = arith.addf %20, %26 : vector<1x256xf32>
    %28 = tpu.iota {dimensions = array<i32: 0>} : vector<4x256xi32>
    %29 = vector.broadcast %6 : vector<1x256xi32> to vector<4x256xi32>
    %30 = arith.cmpi eq, %28, %29 : vector<4x256xi32>
    %cst_9 = arith.constant 0.000000e+00 : f32
    %31 = vector.broadcast %cst_9 : f32 to vector<4x256xf32>
    %32 = arith.select %30, %4, %31 : vector<4x256xi1>, vector<4x256xf32>
    %cst_10 = arith.constant dense<0.000000e+00> : vector<256xf32>
    %33 = vector.multi_reduction <add>, %32, %cst_10 [0] : vector<4x256xf32> to vector<256xf32>
    %34 = vector.shape_cast %33 : vector<256xf32> to vector<1x256xf32>
    %35 = arith.subf %27, %34 : vector<1x256xf32>
    %c0_11 = arith.constant 0 : index
    %c0_12 = arith.constant 0 : index
    %36 = vector.load %arg6[%c0_11, %c0_12] : memref<1x256xf32, #tpu.memory_space<vmem>>, vector<1x256xf32>
    %cst_13 = arith.constant 0.000000e+00 : f32
    %37 = vector.broadcast %cst_13 : f32 to vector<1x256xf32>
    %38 = arith.select %18, %35, %37 : vector<1x256xi1>, vector<1x256xf32>
    %39 = arith.addf %36, %38 : vector<1x256xf32>
    %c0_14 = arith.constant 0 : index
    %c0_15 = arith.constant 0 : index
    %40 = vector.load %arg6[%c0_14, %c0_15] : memref<1x256xf32, #tpu.memory_space<vmem>>, vector<1x256xf32>
    tpu.vector_store %arg6[%c0_14, %c0_15], %39 {strides = array<i32>} : memref<1x256xf32, #tpu.memory_space<vmem>>, vector<1x256xf32>,
    %c0_16 = arith.constant 0 : index
    %c0_17 = arith.constant 0 : index
    %41 = vector.load %arg7[%c0_16, %c0_17] : memref<1x256xf32, #tpu.memory_space<vmem>>, vector<1x256xf32>
    %cst_18 = arith.constant 1.000000e+00 : f32
    %cst_19 = arith.constant 0.000000e+00 : f32
    %42 = vector.broadcast %cst_18 : f32 to vector<1x256xf32>
    %43 = vector.broadcast %cst_19 : f32 to vector<1x256xf32>
    %44 = arith.select %18, %42, %43 : vector<1x256xi1>, vector<1x256xf32>
    %45 = arith.addf %41, %44 : vector<1x256xf32>
    %c0_20 = arith.constant 0 : index
    %c0_21 = arith.constant 0 : index
    %46 = vector.load %arg7[%c0_20, %c0_21] : memref<1x256xf32, #tpu.memory_space<vmem>>, vector<1x256xf32>
    tpu.vector_store %arg7[%c0_20, %c0_21], %45 {strides = array<i32>} : memref<1x256xf32, #tpu.memory_space<vmem>>, vector<1x256xf32>,
    %c0_i32_22 = arith.constant 0 : i32
    %47 = arith.cmpi eq, %arg1, %c0_i32_22 : i32
    %48 = arith.extui %47 : i1 to i32
    %c0_i32_23 = arith.constant 0 : i32
    %49 = arith.cmpi ne, %48, %c0_i32_23 : i32
    scf.if %49 {
      %c0_24 = arith.constant 0 : index
      %c0_25 = arith.constant 0 : index
      %50 = vector.load %arg6[%c0_24, %c0_25] : memref<1x256xf32, #tpu.memory_space<vmem>>, vector<1x256xf32>
      %51 = vector.shape_cast %50 : vector<1x256xf32> to vector<1x1x256xf32>
      %cst_26 = arith.constant dense<0.000000e+00> : vector<1xf32>
      %52 = vector.multi_reduction <add>, %51, %cst_26 [1, 2] : vector<1x1x256xf32> to vector<1xf32>
      %53 = vector.shape_cast %52 : vector<1xf32> to vector<1x1x1xf32>
      %54 = vector.extract %53[0, 0, 0] : f32 from vector<1x1x1xf32>
      %55 = vector.broadcast %54 : f32 to vector<1x1x1xf32>
      %c0_27 = arith.constant 0 : index
      %c0_28 = arith.constant 0 : index
      %c0_29 = arith.constant 0 : index
      %56 = vector.load %arg4[%c0_27, %c0_28, %c0_29] : memref<1x1x1xf32, #tpu.memory_space<vmem>>, vector<1x1x1xf32>
      tpu.vector_store %arg4[%c0_27, %c0_28, %c0_29], %55 {strides = array<i32>} : memref<1x1x1xf32, #tpu.memory_space<vmem>>, vector<1x1x1xf32>,
      %c0_30 = arith.constant 0 : index
      %c0_31 = arith.constant 0 : index
      %57 = vector.load %arg7[%c0_30, %c0_31] : memref<1x256xf32, #tpu.memory_space<vmem>>, vector<1x256xf32>
      %58 = vector.shape_cast %57 : vector<1x256xf32> to vector<1x1x256xf32>
      %cst_32 = arith.constant dense<0.000000e+00> : vector<1xf32>
      %59 = vector.multi_reduction <add>, %58, %cst_32 [1, 2] : vector<1x1x256xf32> to vector<1xf32>
      %60 = vector.shape_cast %59 : vector<1xf32> to vector<1x1x1xf32>
      %61 = vector.extract %60[0, 0, 0] : f32 from vector<1x1x1xf32>
      %62 = vector.broadcast %61 : f32 to vector<1x1x1xf32>
      %c0_33 = arith.constant 0 : index
      %c0_34 = arith.constant 0 : index
      %c0_35 = arith.constant 0 : index
      %63 = vector.load %arg5[%c0_33, %c0_34, %c0_35] : memref<1x1x1xf32, #tpu.memory_space<vmem>>, vector<1x1x1xf32>
      tpu.vector_store %arg5[%c0_33, %c0_34, %c0_35], %62 {strides = array<i32>} : memref<1x1x1xf32, #tpu.memory_space<vmem>>, vector<1x1x1xf32>,
    } else {
    }
    return
  }
  func.func @transform_0(%arg0: i32, %arg1: i32) -> (i32, i32, i32) {
    %c0_i32 = arith.constant 0 : i32
    %c0_i32_0 = arith.constant 0 : i32
    return %arg0, %c0_i32, %arg1 : i32, i32, i32
  }
  func.func @transform_1(%arg0: i32, %arg1: i32) -> (i32, i32, i32) {
    %c0_i32 = arith.constant 0 : i32
    %c0_i32_0 = arith.constant 0 : i32
    return %arg0, %c0_i32, %arg1 : i32, i32, i32
  }
  func.func @transform_2(%arg0: i32, %arg1: i32) -> (i32, i32, i32) {
    %c0_i32 = arith.constant 0 : i32
    %c0_i32_0 = arith.constant 0 : i32
    %c0_i32_1 = arith.constant 0 : i32
    return %arg0, %c0_i32, %c0_i32_0 : i32, i32, i32
  }
  func.func @transform_3(%arg0: i32, %arg1: i32) -> (i32, i32, i32) {
    %c0_i32 = arith.constant 0 : i32
    %c0_i32_0 = arith.constant 0 : i32
    %c0_i32_1 = arith.constant 0 : i32
    return %arg0, %c0_i32, %c0_i32_0 : i32, i32, i32
  }
}

</mosaic_0001>

<bundles_post_ra>
// kernel: tpu_custom_call.1
= control target key start
LH: loop header
LB: loop body
LE: loop exit
PB: predicated region body
PF: predicated region fallthrough
CT: control target
= control target key end

     0   :  { %9 = vsyncpa [#allocation5], 0  ;;  %s1092_s0 = inlined_call_operand.hbm [shape: f32[2,4,256], index: 0, kind: input, shape index: {}]   ;;  %s1093_s1 = inlined_call_operand.hbm [shape: s32[2,1,256], index: 1, kind: input, shape index: {}]   ;;  %s1094_s2 = inlined_call_operand.vmem [shape: f32[2,1,1], index: 2, kind: output, shape index: {0}]   ;;  %s1095_s3 = inlined_call_operand.vmem [shape: f32[2,1,1], index: 3, kind: output, shape index: {1}]  }
   0x1   :  { %11 = vsyncpa [#allocation5 + $0x1], 0 }
   0x2   :  { %12 = vsyncpa [#allocation7], 0 }
   0x3   :  { %14 = vsyncpa [#allocation7 + $0x1], 0  ;;  %s841_s12 = smov 0   ;;  %s843_s13 = smov 0  }
   0x4   :  { %s845_s14 = smov 0   ;;  %s847_s15 = smov 0  }
   0x5   :  { %s849_s16 = smov 0   ;;  %s851_s17 = smov 0  }
   0x6 LB: > { %s609_s18 = sadd.s32 4294967295, %s814_s17   ;;  %s32_s19 = sadd.s32 1, %s810_s16  ;;  %s814_s17 = sphi %s851_s17, %s20_s17   ;;  %s810_s16 = sphi %s849_s16, %s1119_s16   ;;  %s806_s15 = sphi %s847_s15, %s1118_s15   ;;  %s802_s14 = sphi %s845_s14, %s1117_s14   ;;  %s798_s13 = sphi %s843_s13, %s1116_s13   ;;  %s794_s12 = sphi %s841_s12, %s1115_s12  }
   0x7   : > { %p34_p0 = scmp.ge.s32.totalorder %s32_s19, 2  ;;  %s41_s20 = sadd.s32 1, %s802_s14 }
   0x8   : > { %p48_p1 = scmp.ne.s32.totalorder %s802_s14, %s798_s13  ;;  %p49_p2 = scmp.eq.s32.totalorder %s814_s17, 0 }
   0x9   : > { %s1121_s19 = smov (%p34_p0, %s32_s19), 0  ;;  %p54_p4 = scmp.ne.s32.totalorder %s798_s13, %s794_s12 }
   0xa   : > { %p877_p3 = por %p49_p2, %p48_p1  ;;  %s36_s22 = ssub.s32 %s810_s16, %s1121_s19 }
   0xb   : > { %p55_p5 = scmp.eq.s32.totalorder %s609_s18, 0  ;;  %p39_p6 = scmp.eq.s32.totalorder %s36_s22, 0 }
   0xc   : > { %p641_p8 = scmp.lt.s32.totalorder %s814_s17, 2  ;;  %s893_s25 = sand.u32 1, %s802_s14  }
   0xd   : > { %p884_p7 = por %p55_p5, %p54_p4  ;;  %s624_s26 = sshll.u32 %s810_s16, 7 }
   0xe   : > { %s890_s24 = scalar_select %p39_p6, %s802_s14, %s41_s20  }
   0xf   : > { %s1098_s23 = scalar_select %p884_p7, 1, 0 }
  0x10   : > { %s613_s27 = sshll.u32 %s893_s25, 3  ;;  %s900_s30 = scalar_lea.hbm %s1092_s0, %s624_s26 }
  0x11   : > { %s162_s4 = scalar_lea.vmem [#allocation4], %s613_s27  ;;  %p904_p9 = pnand %p641_p8, %p877_p3 }
  0x12   : > { %s172_s5 = sshll.u32 %s162_s4, 4  ;;  %s159_s7 = scalar_lea.sflag [#allocation5], %s893_s25  ;;  %s908_s5 = int_to_ptr.vmem [resolvable:$true] %s172_s5 }
  0x13   : > { %s700_s8 = scalar_lea.hbm %s900_s30, 128  ;;  %p702_p13 = pneg %p904_p9 }
  0x14   : > { %p701_p12 = scmp.ne.s32.totalorder %s900_s30, %s700_s8  ;;  %s705_s11 = scalar_lea.hbm %s1092_s0, 256 }
  0x15   : > { %p706_p2 = scmp.lt.u32.totalorder %s900_s30, %s1092_s0  ;;  %p707_p3 = scmp.lt.u32.totalorder %s705_s11, %s700_s8 }
  0x16   : > { %p703_p0 = pnand %p702_p13, %p701_p12  ;;  %p709_p5 = scmp.lt.u32.totalorder %s700_s8, %s900_s30 }
  0x17   : > { %p708_p4 = por %p707_p3, %p706_p2 }
  0x18   : > { %p704_p1 = pneg %p703_p0 }
  0x19   : > { %p710_p6 = por %p709_p5, %p708_p4 }
  0x1b   : > { %p711_p8 = pnand %p710_p6, %p704_p1 }
  0x1d   : > { %714 = shalt.err (!%p711_p8)
}
  0x1e   : > { %s715_s20 = scalar_lea.vmem %s908_s5, 128  ;;  %s816_s21 = smov [#allocation4]  }
  0x1f   : > { %p716_p12 = scmp.ne.s32.totalorder %s908_s5, %s715_s20  ;;  %s720_s22 = sshll.u32 %s816_s21, 4  ;;  %s721_s22 = int_to_ptr.vmem [resolvable:$false] %s720_s22 }
  0x20   : > { %s722_s26 = scalar_lea.vmem %s721_s22, 256  ;;  %p723_p11 = scmp.lt.s32.totalorder %s908_s5, %s721_s22 }
  0x21   : > { %p718_p0 = pnand %p716_p12, %p702_p13  ;;  %p724_p2 = scmp.lt.s32.totalorder %s722_s26, %s715_s20 }
  0x23   : > { %p719_p10 = pneg %p718_p0  ;;  %p725_p3 = por %p724_p2, %p723_p11 }
  0x25   : > { %p726_p4 = pnand %p725_p3, %p719_p10 }
  0x27   : > { %729 = shalt.err (!%p726_p4)
}
  0x28   : > { %637 = dma.hbm_to_vmem [thread:$0]  (!%p904_p9), %s900_s30, 128, %s908_s5, %s159_s7  }
  0x29   : > { %p1100_p1 = scmp.lt.s32.totalorder %s814_s17, 3  ;;  %p1101_p5 = scmp.ge.s32.totalorder %s814_s17, 1 }
  0x2a   : > { %s616_s28 = sshll.u32 %s893_s25, 1  ;;  %s625_s29 = sshll.u32 %s810_s16, 5 }
  0x2b   : > { %p942_p6 = pnand %p1101_p5, %p1100_p1  ;;  %s951_s9 = scalar_lea.hbm %s1093_s1, %s625_s29 }
  0x2c   : > { %s183_s10 = scalar_lea.vmem [#allocation6], %s616_s28  ;;  %s180_s30 = scalar_lea.sflag [#allocation7], %s893_s25 }
  0x2d   : > { %s1102_s27 = scalar_select %p942_p6, 1, 0 }
  0x2e   : > { %s193_s11 = sshll.u32 %s183_s10, 4  ;;  %s730_s5 = scalar_lea.hbm %s951_s9, 32  ;;  %s194_s11 = int_to_ptr.vmem [resolvable:$true] %s193_s11 }
  0x2f   : > { %p731_p10 = scmp.ne.s32.totalorder %s951_s9, %s730_s5  ;;  %s735_s18 = scalar_lea.hbm %s1093_s1, 64 }
  0x30   : > { %p736_p12 = scmp.lt.u32.totalorder %s951_s9, %s1093_s1  ;;  %p737_p0 = scmp.lt.u32.totalorder %s735_s18, %s730_s5 }
  0x31   : > { %p733_p11 = pnand %p731_p10, %p702_p13  ;;  %p739_p3 = scmp.lt.u32.totalorder %s730_s5, %s951_s9 }
  0x32   : > { %p738_p2 = por %p737_p0, %p736_p12 }
  0x33   : > { %p734_p8 = pneg %p733_p11 }
  0x34   : > { %p740_p4 = por %p739_p3, %p738_p2 }
  0x36   : > { %p741_p1 = pnand %p740_p4, %p734_p8 }
  0x38   : > { %744 = shalt.err (!%p741_p1)
}
  0x39   : > { %s745_s25 = scalar_lea.vmem %s194_s11, 32  ;;  %s817_s22 = smov [#allocation6]  }
  0x3a   : > { %p746_p5 = scmp.ne.s32.totalorder %s194_s11, %s745_s25  ;;  %s750_s26 = sshll.u32 %s817_s22, 4  ;;  %s751_s26 = int_to_ptr.vmem [resolvable:$false] %s750_s26 }
  0x3b   : > { %s752_s28 = scalar_lea.vmem %s751_s26, 64  ;;  %p753_p7 = scmp.lt.s32.totalorder %s194_s11, %s751_s26 }
  0x3c   : > { %p748_p10 = pnand %p746_p5, %p702_p13  ;;  %p754_p6 = scmp.lt.s32.totalorder %s752_s28, %s745_s25 }
  0x3e   : > { %p749_p11 = pneg %p748_p10  ;;  %p755_p0 = por %p754_p6, %p753_p7 }
  0x40   : > { %p756_p12 = pnand %p755_p0, %p749_p11 }
  0x42   : > { %759 = shalt.err (!%p756_p12)
}
  0x43   : > { %640 = dma.hbm_to_vmem [thread:$0]  (!%p904_p9), %s951_s9, 32, %s194_s11, %s180_s30  }
  0x44   : > { %p1103_p8 = scmp.ne.s32.totalorder %s1102_s27, 0 }
  0x45   : > { %s204_s29 = sand.u32 (!%p1103_p8), 1, %s798_s13   ;;  %p1104_p13 = scmp.ne.s32.totalorder (!%p1103_p8), %s1098_s23, 0 }
  0x46   : > { %202 = sbr.rel (%p1103_p8) target bundleno = 381 (0x17d), region = 28  ;;  %s620_s4 = sshll.u32 (!%p1103_p8), %s204_s29, 3 }
  0x47   : > { %s205_s8 = scalar_lea.sflag (!%p1103_p8), [#allocation5], %s204_s29  ;;  %s208_s10 = scalar_lea.vmem (!%p1103_p8), [#allocation4], %s620_s4 }
  0x4d   : > { %785 = dma.done.wait (%p1104_p13), %s205_s8, 128  }
  0x4e   : > { %787 = vsyncadd (%p1104_p13), %s205_s8, 4294967168  ;;  %s621_s5 = sshll.u32 %s204_s29, 1  ;;  %s214_s7 = scalar_lea.sflag [#allocation7], %s204_s29 }
  0x4f   : > { %s217_s6 = scalar_lea.vmem [#allocation6], %s621_s5 }
  0x50   : > { %789 = dma.done.wait (%p1104_p13), %s214_s7, 32  }
  0x51   : > { %791 = vsyncadd (%p1104_p13), %s214_s7, 4294967264  ;;  %v258_v0 = vlaneseq  ;;  %v818_v2 = vmov 0.0   ;;  %vm306_vm1 = vcmask 1043456   ;;  %v264_v4 = vld [vmem:[%s208_s10] sm:$0xff]  ;;  %v265_v5 = vld [vmem:[%s217_s6] sm:$0x3] }
  0x52   : > { %vm275_vm2 = vcmp.ge.s32.totalorder %v265_v5, 0  ;;  %vm289_vm3 = vcmp.lt.s32.totalorder %v265_v5, 4  ;;  %v304_v8 = vcombine.high %v264_v4, %v264_v4  ;;  %v307_v9 = vsel %vm306_vm1, %v264_v4, -inf  ;;  %p248_p7 = scmp.lt.s32.totalorder %s806_s15, 1 }
  0x53   : > { %vm984_vm0 = vcmp.lt.s32.totalorder %v258_v0, 256  ;;  %v278_v3 = vshrl.u32 %v258_v0, 7  ;;  %v819_v10 = vmov 0   ;;  %v308_v13 = vrot.slane %v307_v9, 4 }
  0x54   : > { %262 = vst.msk [vmem:[#allocation2] sm:$0x3] %vm984_vm0, %v818_v2  ;;  %263 = vst.msk [vmem:[#allocation3] sm:$0x3] %vm984_vm0, %v818_v2  ;;  %v276_v11 = vsel %vm275_vm2, 1, %v819_v10  ;;  %v290_v12 = vsel %vm289_vm3, 1, %v819_v10 }
  0x55   : > { %v992_v6 = vsub.s32 0, %v278_v3  ;;  %v994_v7 = vsub.s32 1, %v278_v3  ;;  %v820_v14 = vmov 1966171168   ;;  %v309_v20 = vmax.f32 %v307_v9, %v308_v13  ;;  %s1123_s15 = smov (!%p248_p7, %s806_s15), 1 }
  0x56   : > { %v388_v15 = vunpack.c.l.s4 %v820_v14  ;;  %v314_v21 = vsel %vm306_vm1, %v304_v8, -inf  ;;  %vm446_vm12 = vcmask 1040384   ;;  %s250_s9 = scalar_lea.vmem %s1094_s2, %s1123_s15  ;;  %vm460_vm13 = vcmask 0   ;;  %s253_s18 = scalar_lea.vmem %s1095_s3, %s1123_s15 }
  0x57   : > { %v280_v16 = vrot.slane %v276_v11, %v992_v6  ;;  %v284_v17 = vrot.slane %v276_v11, %v994_v7  ;;  %v294_v18 = vrot.slane %v290_v12, %v992_v6  ;;  %v298_v19 = vrot.slane %v290_v12, %v994_v7 }
  0x58   : > { %v310_v26 = vrot.slane %v309_v20, 2  ;;  %v315_v27 = vrot.slane %v314_v21, 4  ;;  %v389_v28 = vunpack.c.0.s8 %v388_v15  ;;  %v356_v48 = vrot.slane %v265_v5, %v992_v6 }
  0x59   : > { %vm1002_vm4 = vcmp.ne.s32.totalorder %v280_v16, 0  ;;  %vm1006_vm5 = vcmp.ne.s32.totalorder %v284_v17, 0  ;;  %vm1010_vm6 = vcmp.ne.s32.totalorder %v294_v18, 0  ;;  %vm1014_vm7 = vcmp.ne.s32.totalorder %v298_v19, 0 }
  0x5a   : > { %vm301_vm8 = vmand %vm1002_vm4, %vm1010_vm6  ;;  %v311_v30 = vmax.f32 %v309_v20, %v310_v26  ;;  %v316_v31 = vmax.f32 %v314_v21, %v315_v27  ;;  %v1036_v35 = vsub.s32 %v389_v28, %v278_v3  ;;  %v360_v49 = vrot.slane %v265_v5, %v994_v7 }
  0x5b   : > { %v409_v29 = vsel %vm301_vm8, 1.0, %v818_v2  ;;  %vm302_vm9 = vmand %vm1006_vm5, %vm1014_vm7  ;;  %v408_v39 = vld [vmem:[#allocation3] sm:$0x3]  ;;  %vm361_vm10 = vcmp.eq.s32.totalorder %v278_v3, %v356_v48 }
  0x5c   : > { %v410_v32 = vsel %vm302_vm9, 1.0, %v818_v2  ;;  %v312_v33 = vrot.slane %v311_v30, 1  ;;  %v317_v34 = vrot.slane %v316_v31, 2  ;;  %vm362_vm11 = vcmp.eq.s32.totalorder %v278_v3, %v360_v49 }
  0x5d   : > { %v413_v36 = vcombine.low %v409_v29, %v410_v32  ;;  %v363_v50 = vsel %vm361_vm10, %v264_v4, 0.0  ;;  %v364_v54 = vsel %vm362_vm11, %v304_v8, 0.0 }
  0x5e   : > { %v318_v37 = vmax.f32 %v316_v31, %v317_v34  ;;  %v313_v40 = vmax.f32 %v311_v30, %v312_v33  ;;  %v365_v56 = vsel %vm306_vm1, %v363_v50, 0.0  ;;  %v372_v60 = vsel %vm306_vm1, %v364_v54, 0.0 }
  0x5f   : > { %v420_v38 = vrot.slane %v413_v36, %v1036_v35  ;;  %v366_v61 = vrot.slane %v365_v56, 4  ;;  %v373_v0 = vrot.slane %v372_v60, 4 }
  0x60   : > { %v319_v41 = vrot.slane %v318_v37, 1 }
  0x61   : > { %v427_v42 = vrot.slane %v420_v38, %v1036_v35  ;;  %v374_v10 = vadd.f32 %v373_v0, %v372_v60  ;;  %v381_v38 = vld [vmem:[#allocation2] sm:$0x3] }
  0x62   : > { %v320_v43 = vmax.f32 %v318_v37, %v319_v41 }
  0x63   : > { %v429_v44 = vadd.f32 %v427_v42, %v408_v39  ;;  %v375_v14 = vrot.slane %v374_v10, 2 }
  0x64   : > { %v323_v45 = vcombine.low %v313_v40, %v320_v43 }
  0x65   : > { %430 = vst.msk [vmem:[#allocation3] sm:$0x3] %vm984_vm0, %v429_v44  ;;  %v376_v16 = vadd.f32 %v375_v14, %v374_v10 }
  0x66   : > { %v325_v46 = vsub.f32 %v264_v4, %v323_v45  ;;  %v367_v4 = vadd.f32 %v366_v61, %v365_v56 }
  0x67   : > { %v377_v18 = vrot.slane %v376_v16, 1 }
  0x68   : > { %v326_v47 = vmul.f32 1.442695, %v325_v46  ;;  %v368_v12 = vrot.slane %v367_v4, 2 }
  0x69   : > { %v378_v29 = vadd.f32 %v377_v18, %v376_v16 }
  0x6a   : > { %694 = vpow2.f32 %v326_v47  ;;  %v369_v15 = vadd.f32 %v368_v12, %v367_v4 }
  0x6c   : > { %v370_v17 = vrot.slane %v369_v15, 1  ;;  %v462_v22 = vld [vmem:[#allocation3] sm:$0x3] }
  0x6d   : > { %v467_v24 = vrot.slane %v462_v22, %v992_v6  ;;  %v471_v41 = vrot.slane %v462_v22, %v994_v7 }
  0x6e   : > { %v371_v21 = vadd.f32 %v370_v17, %v369_v15 }
  0x6f   : > { %v474_v45 = vsel %vm446_vm12, %v467_v24, 0.0  ;;  %v475_v46 = vsel %vm446_vm12, %v471_v41, 0.0 }
  0x70   : > { %v476_v47 = vadd.f32 %v475_v46, %v474_v45 }
  0x74   : > { %v695_v51 = vpop.eup %694 }
  0x75   : > { %v329_v52 = vcombine.high %v695_v51, %v695_v51  ;;  %v331_v53 = vsel %vm306_vm1, %v695_v51, 0.0 }
  0x76   : > { %v332_v55 = vrot.slane %v331_v53, 4 }
  0x77   : > { %v338_v57 = vsel %vm306_vm1, %v329_v52, 0.0 }
  0x78   : > { %v333_v58 = vadd.f32 %v332_v55, %v331_v53  ;;  %v339_v59 = vrot.slane %v338_v57, 4 }
  0x7a   : > { %v334_v62 = vrot.slane %v333_v58, 2  ;;  %v340_v63 = vadd.f32 %v339_v59, %v338_v57 }
  0x7c   : > { %v335_v2 = vadd.f32 %v334_v62, %v333_v58  ;;  %v341_v3 = vrot.slane %v340_v63, 2 }
  0x7e   : > { %v336_v5 = vrot.slane %v335_v2, 1  ;;  %v342_v9 = vadd.f32 %v341_v3, %v340_v63 }
  0x80   : > { %v337_v8 = vadd.f32 %v336_v5, %v335_v2  ;;  %v343_v11 = vrot.slane %v342_v9, 1 }
  0x82   : > { %v344_v13 = vadd.f32 %v343_v11, %v342_v9  ;;  %696 = vlog2.f32 %v337_v8 }
  0x84   : > { %698 = vlog2.f32 %v344_v13 }
  0x8c   : > { %v697_v19 = vpop.eup %696 }
  0x8d   : > { %v346_v20 = vmul.f32 0.6931472, %v697_v19 }
  0x8e   : > { %v699_v26 = vpop.eup %698 }
  0x8f   : > { %v348_v27 = vmul.f32 0.6931472, %v699_v26  ;;  %v349_v28 = vadd.f32 %v346_v20, %v313_v40 }
  0x91   : > { %v350_v30 = vadd.f32 %v348_v27, %v320_v43  ;;  %v379_v31 = vsub.f32 %v349_v28, %v371_v21 }
  0x93   : > { %v380_v32 = vsub.f32 %v350_v30, %v378_v29  ;;  %v382_v33 = vsel %vm301_vm8, %v379_v31, 0.0 }
  0x95   : > { %v383_v34 = vsel %vm302_vm9, %v380_v32, 0.0 }
  0x96   : > { %v386_v36 = vcombine.low %v382_v33, %v383_v34 }
  0x98   : > { %v393_v37 = vrot.slane %v386_v36, %v1036_v35 }
  0x9a   : > { %v400_v39 = vrot.slane %v393_v37, %v1036_v35 }
  0x9c   : > { %v402_v40 = vadd.f32 %v400_v39, %v381_v38 }
  0x9e   : > { %407 = vst.msk [vmem:[#allocation2] sm:$0x3] %vm984_vm0, %v402_v40 }
  0xa5   : > { %v434_v23 = vld [vmem:[#allocation2] sm:$0x3] }
  0xa6   : > { %v439_v25 = vrot.slane %v434_v23, %v992_v6  ;;  %v443_v42 = vrot.slane %v434_v23, %v994_v7 }
  0xa8   : > { %v447_v43 = vsel %vm446_vm12, %v439_v25, 0.0  ;;  %v448_v44 = vsel %vm446_vm12, %v443_v42, 0.0 }
  0xa9   : > { %v449_v35 = vadd.f32 %v448_v44, %v447_v43 }
  0xab   : > { %450 = vadd.xlane.f32.xlu0 %v449_v35 }
  0xaf   : > { %477 = vadd.xlane.f32.xlu0 %v476_v47 }
 0x138   : > { %v451_v1 = vpop.xlane.xlu0 %450 }
 0x139   : > { %v452_v48 = vrot.slane %v451_v1, 4 }
 0x13b   : > { %v453_v49 = vadd.f32 %v452_v48, %v451_v1 }
 0x13c   : > { %v478_v50 = vpop.xlane.xlu0 %477 }
 0x13d   : > { %v454_v51 = vrot.slane %v453_v49, 2  ;;  %v479_v52 = vrot.slane %v478_v50, 4 }
 0x13f   : > { %v480_v53 = vadd.f32 %v479_v52, %v478_v50  ;;  %v455_v6 = vadd.f32 %v454_v51, %v453_v49 }
 0x141   : > { %v481_v54 = vrot.slane %v480_v53, 2  ;;  %v456_v7 = vrot.slane %v455_v6, 1 }
 0x143   : > { %v482_v55 = vadd.f32 %v481_v54, %v480_v53  ;;  %v457_v56 = vadd.f32 %v456_v7, %v455_v6 }
 0x145   : > { %626 = vpush %v457_v56  ;;  %v483_v57 = vrot.slane %v482_v55, 1 }
 0x147   : > { %v484_v58 = vadd.f32 %v483_v57, %v482_v55 }
 0x149   : > { %628 = vpush %v484_v58 }
 0x176   : > { %s627_s11 = spop %626 }
 0x177   : > { %v459_v59 = vstv %s627_s11 }
 0x178   : > { %461 = vst.msk [vmem:[%s250_s9] sm:$0x1] %vm460_vm13, %v459_v59 }
 0x17a   : > { %s629_s20 = spop %628 }
 0x17b   : > { %v486_v60 = vstv %s629_s20 }
 0x17c   : > { %487 = vst.msk [vmem:[%s253_s18] sm:$0x1] %vm460_vm13, %v486_v60 }
 0x17d PF: > { %s20_s17 = sadd.s32 1, %s814_s17   ;;  %s1115_s12 = smov %s798_s13 }
 0x17e   : > { %p17_p9 = scmp.ge.s32.totalorder %s20_s17, 4   ;;  %s1116_s13 = smov %s802_s14 }
 0x17f   : > { %s1117_s14 = smov %s890_s24  ;;  %s1118_s15 = smov %s810_s16 }
 0x180   : > { %s1119_s16 = smov %s1121_s19  ;;  %19 = sbr.rel (!%p17_p9) target bundleno = 6 (0x6), region = 101 }
 0x187   :  { %517 = vsyncpa [#allocation5], 1 }
 0x188   :  { %519 = vsyncpa [#allocation5 + $0x1], 1 }
 0x189   :  { %520 = vsyncpa [#allocation7], 1 }
 0x18a   :  { %522 = vsyncpa [#allocation7 + $0x1], 1 }

</bundles_post_ra>
